<compile_context>
chip_gen: v7x
topology: tpu7x:2x2x1
jax: 0.10.0
libtpu: 0.0.40
codegen_flags: <defaults>
</compile_context>

<pallas_src>
import jax
import jax.numpy as jnp
from jax import lax
from jax.experimental import pallas as pl
from jax.experimental.pallas import tpu as pltpu

B = 4            # number of ensemble members (torch `b`)
D = 32           # feature dim of each sub-model Linear(D, 1)
N = 8            # demo batch size
P_ROWS = 4 * B   # parameter-slab rows; see pack_params() for the layout


def fused_kernel(x_ref, p_ref, buf_ref):
    """One grid step: `bm` contiguous rows of x -> `bm` chunk-major output rows.

    Chunk-major output layout (q = global B-row chunk index of x, G = N // B):
        buf[q*B + i, 0:B]   = xpt_logical[i*G + q, :]
        buf[q*B + i, B:2B]  = out_logical[i*G + q]   (lane-broadcast)
    The wrapper undoes the chunk-major ordering with a tiny reshape/transpose.
    """
    bm = x_ref.shape[0]          # rows handled by this step (static)
    cps = bm // B                # chunks per step (static; loops unroll at trace time)

    # ---- static slices of the packed parameter slab ------------------------
    wens = p_ref[0:B, :]                                   # (B, D) ensemble head weights
    bens_b = p_ref[B:2 * B, 0:B]                           # (B, B) head bias, lane-broadcast

    # ---- ensemble heads for the whole block: y[i, m] = w_i . x_m -----------
    y = lax.dot_general(wens, x_ref[...], (((1,), (1,)), ((), ())),
                        preferred_element_type=jnp.float32)          # (B, bm)

    # ---- torch .view(N, B): place each (B, B) chunk contiguously (chunk-major)
    for lq in range(cps):
        buf_ref[lq * B:(lq + 1) * B, 0:B] = y[:, lq * B:(lq + 1) * B] + bens_b

    # ---- aggregate MLP on all bm chunk-major rows at once -------------------
    h = buf_ref[:, 0:B]                                               # (bm, B)
    for l in range(3):                                                # unrolled
        w_l = p_ref[2 * B:3 * B, l * B:(l + 1) * B]                   # (B, B)
        b_l = p_ref[3 * B:3 * B + 1, l * B:(l + 1) * B]               # (1, B)
        h = jnp.maximum(
            jnp.dot(h, w_l, preferred_element_type=jnp.float32) + b_l, 0.0)
    w4 = p_ref[3 * B:3 * B + 1, 3 * B:4 * B]                          # (1, B)
    b4 = p_ref[3 * B:3 * B + 1, 4 * B:4 * B + 1]                      # (1, 1)
    # Final Linear(B, 1): VPU mul + XLU lane reduction (no 1-wide MXU output).
    out_col = jnp.sum(h * w4, axis=-1, keepdims=True) + b4            # (bm, 1)
    buf_ref[:, B:2 * B] = jnp.broadcast_to(out_col, (bm, B))


def pack_params(wens, bens, w1, b1, w2, b2, w3, b3, w4, b4):
    """One-time packing of every parameter into a single lane-dense f32 slab."""
    assert D >= 4 * B + 1 and D >= 3 * B
    p = jnp.zeros((P_ROWS, D), jnp.float32)
    p = p.at[0:B, :].set(wens)                                        # rows 0:B   -> wens (B, D)
    p = p.at[B:2 * B, 0:B].set(jnp.broadcast_to(bens, (B, B)))        # rows B:2B  -> bens lane-bcast
    p = p.at[2 * B:3 * B, 0:B].set(w1)                                # rows 2B:3B -> w1 | w2 | w3
    p = p.at[2 * B:3 * B, B:2 * B].set(w2)
    p = p.at[2 * B:3 * B, 2 * B:3 * B].set(w3)
    p = p.at[3 * B, 0:B].set(b1[0])                                   # row 3B     -> b1|b2|b3|w4|b4
    p = p.at[3 * B, B:2 * B].set(b2[0])
    p = p.at[3 * B, 2 * B:3 * B].set(b3[0])
    p = p.at[3 * B, 3 * B:4 * B].set(w4[0])
    p = p.at[3 * B, 4 * B].set(b4[0, 0])
    return p


def _pick_block_rows(n):
    # Largest row block (<= 512) that divides n and is a multiple of B (and of the
    # 8-sublane tile when possible).  The demo uses n = 8 -> one grid step.
    for cand in (512, 256, 128, 64, 32, 16, 8):
        if cand <= n and n % cand == 0 and cand % B == 0:
            return cand
    return n


@jax.jit
def my_ensemble_forward(x, params):
    n, d = x.shape
    assert d == D
    assert n % B == 0, "chunk decomposition of torch .view(N, b) assumes b | N"
    bm = _pick_block_rows(n)

    buf = pl.pallas_call(
        fused_kernel,
        out_shape=jax.ShapeDtypeStruct((n, 2 * B), jnp.float32),
        grid=(n // bm,),
        in_specs=[pl.BlockSpec((bm, D), lambda t: (t, 0)),            # x row-block
                  pl.BlockSpec((P_ROWS, D), lambda t: (0, 0))],       # params (grid-invariant)
        out_specs=pl.BlockSpec((bm, 2 * B), lambda t: (t, 0)),        # merged, chunk-major
        compiler_params=pltpu.CompilerParams(
            dimension_semantics=("parallel",)),                       # shards across v7x's 2 TCs
    )(x, params)

    # Undo chunk-major ordering: buf[q*B + i] -> logical row i*G + q.
    g = n // B
    merged = buf.reshape(g, B, 2 * B).transpose(1, 0, 2).reshape(n, 2 * B)
    x_prime_t = merged[:, :B]
    out = merged[:, B:B + 1]
    return x_prime_t, out


def reference(x, wens, bens, w1, b1, w2, b2, w3, b3, w4, b4):
    y = x @ wens.T + bens.T                     # (N, B); y[j, i] = model_i(x_j)
    x_prime = y.T                               # (B, N)
    xpt = x_prime.reshape(x.shape[0], B)        # torch .view(N, b) semantics
    h = jnp.maximum(xpt @ w1 + b1, 0.0)
    h = jnp.maximum(h @ w2 + b2, 0.0)
    h = jnp.maximum(h @ w3 + b3, 0.0)
    out = jnp.sum(h * w4, axis=-1, keepdims=True) + b4
    return xpt, out


if __name__ == "__main__":
    key = jax.random.PRNGKey(0)
    ks = jax.random.split(key, 11)

    x = jax.random.normal(ks[0], (N, D), jnp.float32)

    # Deterministic synthetic parameters (shapes implied by the module).
    wens = 0.10 * jax.random.normal(ks[1], (B, D), jnp.float32)   # b Linear(D,1) heads, stacked rows
    bens = 0.10 * jax.random.normal(ks[2], (B, 1), jnp.float32)
    w1 = 0.50 * jax.random.normal(ks[3], (B, B), jnp.float32)     # Linear(b,b), (in,out) layout
    b1 = 0.10 * jax.random.normal(ks[4], (1, B), jnp.float32)
    w2 = 0.50 * jax.random.normal(ks[5], (B, B), jnp.float32)
    b2 = 0.10 * jax.random.normal(ks[6], (1, B), jnp.float32)
    w3 = 0.50 * jax.random.normal(ks[7], (B, B), jnp.float32)
    b3 = 0.10 * jax.random.normal(ks[8], (1, B), jnp.float32)
    w4 = 0.50 * jax.random.normal(ks[9], (1, B), jnp.float32)     # Linear(b,1) weights as a row
    b4 = 0.10 * jax.random.normal(ks[10], (1, 1), jnp.float32)

    # One-time packing of all parameters into a single lane-dense slab.
    params = pack_params(wens, bens, w1, b1, w2, b2, w3, b3, w4, b4)

    xpt, out = my_ensemble_forward(x, params)
    jax.block_until_ready((xpt, out))

    ref_xpt, ref_out = reference(x, wens, bens, w1, b1, w2, b2, w3, b3, w4, b4)
    assert xpt.shape == (N, B) and out.shape == (N, 1)
    assert jnp.allclose(xpt, ref_xpt, atol=1e-5, rtol=1e-5)
    assert jnp.allclose(out, ref_out, atol=1e-5, rtol=1e-5)

    print("KERNEL_OK")
</pallas_src>

<mosaic_0001>
module attributes {stable_mosaic.version = 11 : i64} {
  func.func @fused_kernel(%arg0: i32, %arg1: memref<8x32xf32, #tpu.memory_space<vmem>>, %arg2: memref<16x32xf32, #tpu.memory_space<vmem>>, %arg3: memref<8x8xf32, #tpu.memory_space<vmem>>) attributes {dimension_semantics = [#tpu.dimension_semantics<parallel>], iteration_bounds = array<i64: 1>, scalar_prefetch = 0 : i64, scratch_operands = 0 : i64, tpu.core_type = #tpu.core_type<tc>, window_params = [{transform_indices = @transform_0, window_bounds = array<i64: 8, 32>}, {pipeline_mode = #tpu.pipeline_mode<synchronous>, transform_indices = @transform_1, window_bounds = array<i64: 16, 32>}, {transform_indices = @transform_2, window_bounds = array<i64: 8, 8>}]} {
    %c0 = arith.constant 0 : index
    %c0_0 = arith.constant 0 : index
    %0 = vector.load %arg2[%c0, %c0_0] : memref<16x32xf32, #tpu.memory_space<vmem>>, vector<4x32xf32>
    %c4 = arith.constant 4 : index
    %c0_1 = arith.constant 0 : index
    %1 = vector.load %arg2[%c4, %c0_1] : memref<16x32xf32, #tpu.memory_space<vmem>>, vector<4x4xf32>
    %c0_2 = arith.constant 0 : index
    %c0_3 = arith.constant 0 : index
    %2 = vector.load %arg1[%c0_2, %c0_3] : memref<8x32xf32, #tpu.memory_space<vmem>>, vector<8x32xf32>
    %cst = arith.constant dense<0.000000e+00> : vector<4x8xf32>
    %3 = tpu.matmul %0, %2, %cst {dimension_numbers = #tpu.dot_dimension_numbers<[1], [1], [0], [0], [0, 0, 1, 0], [], []>} : vector<4x32xf32>, vector<8x32xf32>, vector<4x8xf32> -> vector<4x8xf32>
    %4 = vector.extract_strided_slice %3 {offsets = [0, 0], sizes = [4, 4], strides = [1, 1]} : vector<4x8xf32> to vector<4x4xf32>
    %5 = arith.addf %4, %1 : vector<4x4xf32>
    %c0_4 = arith.constant 0 : index
    %c0_5 = arith.constant 0 : index
    %6 = vector.load %arg3[%c0_4, %c0_5] : memref<8x8xf32, #tpu.memory_space<vmem>>, vector<4x4xf32>
    tpu.vector_store %arg3[%c0_4, %c0_5], %5 {strides = array<i32>} : memref<8x8xf32, #tpu.memory_space<vmem>>, vector<4x4xf32>,
    %7 = vector.extract_strided_slice %3 {offsets = [0, 4], sizes = [4, 4], strides = [1, 1]} : vector<4x8xf32> to vector<4x4xf32>
    %8 = arith.addf %7, %1 : vector<4x4xf32>
    %c4_6 = arith.constant 4 : index
    %c0_7 = arith.constant 0 : index
    %9 = vector.load %arg3[%c4_6, %c0_7] : memref<8x8xf32, #tpu.memory_space<vmem>>, vector<4x4xf32>
    tpu.vector_store %arg3[%c4_6, %c0_7], %8 {strides = array<i32>} : memref<8x8xf32, #tpu.memory_space<vmem>>, vector<4x4xf32>,
    %c0_8 = arith.constant 0 : index
    %c0_9 = arith.constant 0 : index
    %10 = vector.load %arg3[%c0_8, %c0_9] : memref<8x8xf32, #tpu.memory_space<vmem>>, vector<8x4xf32>
    %c8 = arith.constant 8 : index
    %c0_10 = arith.constant 0 : index
    %11 = vector.load %arg2[%c8, %c0_10] : memref<16x32xf32, #tpu.memory_space<vmem>>, vector<4x4xf32>
    %c12 = arith.constant 12 : index
    %c0_11 = arith.constant 0 : index
    %12 = vector.load %arg2[%c12, %c0_11] : memref<16x32xf32, #tpu.memory_space<vmem>>, vector<1x4xf32>
    %cst_12 = arith.constant dense<0.000000e+00> : vector<8x4xf32>
    %13 = tpu.matmul %10, %11, %cst_12 {dimension_numbers = #tpu.dot_dimension_numbers<[1], [0], [0], [1], [0, 0, 1, 1], [], []>} : vector<8x4xf32>, vector<4x4xf32>, vector<8x4xf32> -> vector<8x4xf32>
    %14 = vector.broadcast %12 : vector<1x4xf32> to vector<8x4xf32>
    %15 = arith.addf %13, %14 : vector<8x4xf32>
    %cst_13 = arith.constant 0.000000e+00 : f32
    %16 = vector.broadcast %cst_13 : f32 to vector<8x4xf32>
    %17 = arith.maximumf %15, %16 : vector<8x4xf32>
    %c8_14 = arith.constant 8 : index
    %c4_15 = arith.constant 4 : index
    %18 = vector.load %arg2[%c8_14, %c4_15] : memref<16x32xf32, #tpu.memory_space<vmem>>, vector<4x4xf32>
    %c12_16 = arith.constant 12 : index
    %c4_17 = arith.constant 4 : index
    %19 = vector.load %arg2[%c12_16, %c4_17] : memref<16x32xf32, #tpu.memory_space<vmem>>, vector<1x4xf32>
    %cst_18 = arith.constant dense<0.000000e+00> : vector<8x4xf32>
    %20 = tpu.matmul %17, %18, %cst_18 {dimension_numbers = #tpu.dot_dimension_numbers<[1], [0], [0], [1], [0, 0, 1, 1], [], []>} : vector<8x4xf32>, vector<4x4xf32>, vector<8x4xf32> -> vector<8x4xf32>
    %21 = vector.broadcast %19 : vector<1x4xf32> to vector<8x4xf32>
    %22 = arith.addf %20, %21 : vector<8x4xf32>
    %cst_19 = arith.constant 0.000000e+00 : f32
    %23 = vector.broadcast %cst_19 : f32 to vector<8x4xf32>
    %24 = arith.maximumf %22, %23 : vector<8x4xf32>
    %c8_20 = arith.constant 8 : index
    %c8_21 = arith.constant 8 : index
    %25 = vector.load %arg2[%c8_20, %c8_21] : memref<16x32xf32, #tpu.memory_space<vmem>>, vector<4x4xf32>
    %c12_22 = arith.constant 12 : index
    %c8_23 = arith.constant 8 : index
    %26 = vector.load %arg2[%c12_22, %c8_23] : memref<16x32xf32, #tpu.memory_space<vmem>>, vector<1x4xf32>
    %cst_24 = arith.constant dense<0.000000e+00> : vector<8x4xf32>
    %27 = tpu.matmul %24, %25, %cst_24 {dimension_numbers = #tpu.dot_dimension_numbers<[1], [0], [0], [1], [0, 0, 1, 1], [], []>} : vector<8x4xf32>, vector<4x4xf32>, vector<8x4xf32> -> vector<8x4xf32>
    %28 = vector.broadcast %26 : vector<1x4xf32> to vector<8x4xf32>
    %29 = arith.addf %27, %28 : vector<8x4xf32>
    %cst_25 = arith.constant 0.000000e+00 : f32
    %30 = vector.broadcast %cst_25 : f32 to vector<8x4xf32>
    %31 = arith.maximumf %29, %30 : vector<8x4xf32>
    %c12_26 = arith.constant 12 : index
    %c12_27 = arith.constant 12 : index
    %32 = vector.load %arg2[%c12_26, %c12_27] : memref<16x32xf32, #tpu.memory_space<vmem>>, vector<1x4xf32>
    %c12_28 = arith.constant 12 : index
    %c16 = arith.constant 16 : index
    %33 = vector.load %arg2[%c12_28, %c16] : memref<16x32xf32, #tpu.memory_space<vmem>>, vector<1x1xf32>
    %34 = vector.broadcast %32 : vector<1x4xf32> to vector<8x4xf32>
    %35 = arith.mulf %31, %34 : vector<8x4xf32>
    %cst_29 = arith.constant dense<0.000000e+00> : vector<8xf32>
    %36 = vector.multi_reduction <add>, %35, %cst_29 [1] : vector<8x4xf32> to vector<8xf32>
    %37 = vector.shape_cast %36 : vector<8xf32> to vector<8x1xf32>
    %38 = vector.broadcast %33 : vector<1x1xf32> to vector<8x1xf32>
    %39 = arith.addf %37, %38 : vector<8x1xf32>
    %40 = vector.shape_cast %39 : vector<8x1xf32> to vector<8x1xf32>
    %41 = vector.broadcast %40 : vector<8x1xf32> to vector<8x4xf32>
    %c0_30 = arith.constant 0 : index
    %c4_31 = arith.constant 4 : index
    %42 = vector.load %arg3[%c0_30, %c4_31] : memref<8x8xf32, #tpu.memory_space<vmem>>, vector<8x4xf32>
    tpu.vector_store %arg3[%c0_30, %c4_31], %41 {strides = array<i32>} : memref<8x8xf32, #tpu.memory_space<vmem>>, vector<8x4xf32>,
    return
  }
  func.func @transform_0(%arg0: i32) -> (i32, i32) {
    %c0_i32 = arith.constant 0 : i32
    %c0_i32_0 = arith.constant 0 : i32
    return %arg0, %c0_i32 : i32, i32
  }
  func.func @transform_1(%arg0: i32) -> (i32, i32) {
    %c0_i32 = arith.constant 0 : i32
    %c0_i32_0 = arith.constant 0 : i32
    %c0_i32_1 = arith.constant 0 : i32
    return %c0_i32, %c0_i32_0 : i32, i32
  }
  func.func @transform_2(%arg0: i32) -> (i32, i32) {
    %c0_i32 = arith.constant 0 : i32
    %c0_i32_0 = arith.constant 0 : i32
    return %arg0, %c0_i32 : i32, i32
  }
}

</mosaic_0001>

<bundles_post_ra>
// kernel: my_ensemble_forward.1
= control target key start
LH: loop header
LB: loop body
LE: loop exit
PB: predicated region body
PF: predicated region fallthrough
CT: control target
= control target key end

     0   :  { %7 = vsyncpa [#allocation3], 0  ;;  %s577_s0 = inlined_call_operand.hbm [shape: f32[8,32], index: 0, kind: input, shape index: {}]   ;;  %s578_s1 = inlined_call_operand.hbm [shape: f32[16,32], index: 1, kind: input, shape index: {}]   ;;  %s579_s2 = inlined_call_operand.vmem [shape: f32[8,8], index: 2, kind: output, shape index: {}]  }
   0x1   :  { %8 = vsyncpa [#allocation5], 0  ;;  %s497_s9 = smov [#allocation2]   ;;  %s498_s11 = smov [#allocation4]  }
   0x2   :  { %s15_s10 = sshll.u32 %s497_s9, 4  ;;  %s24_s12 = sshll.u32 %s498_s11, 4  ;;  %s16_s10 = int_to_ptr.vmem [resolvable:$true] %s15_s10  ;;  %s523_s12 = int_to_ptr.vmem [resolvable:$true] %s24_s12 }
   0x3   :  { %s449_s15 = scalar_lea.hbm %s577_s0, 128 }
   0x4   :  { %p450_p0 = scmp.ne.s32.totalorder %s577_s0, %s449_s15  ;;  %p453_p1 = scmp.lt.u32.totalorder %s449_s15, %s577_s0 }
   0x6   :  { %p455_p2 = pnand %p453_p1, %p450_p0 }
   0x8   :  { %458 = shalt.err (!%p455_p2)
}
   0x9   :  { %s459_s20 = scalar_lea.vmem %s16_s10, 128  ;;  %p464_p4 = scmp.lt.s32.totalorder %s16_s10, %s16_s10 }
   0xa   :  { %p460_p3 = scmp.ne.s32.totalorder %s16_s10, %s459_s20  ;;  %p465_p5 = scmp.lt.s32.totalorder %s459_s20, %s459_s20 }
   0xc   :  { %p466_p6 = por %p465_p5, %p464_p4 }
   0xe   :  { %p467_p7 = pnand %p466_p6, %p460_p3 }
  0x10   :  { %470 = shalt.err (!%p467_p7)
}
  0x11   :  { %18 = dma.hbm_to_vmem [thread:$0]  %s577_s0, 128, %s16_s10, [#allocation3]  }
  0x12   :  { %s471_s25 = scalar_lea.hbm %s578_s1, 256 }
  0x13   :  { %p472_p8 = scmp.ne.s32.totalorder %s578_s1, %s471_s25  ;;  %p475_p9 = scmp.lt.u32.totalorder %s471_s25, %s578_s1 }
  0x15   :  { %p477_p10 = pnand %p475_p9, %p472_p8 }
  0x17   :  { %480 = shalt.err (!%p477_p10)
}
  0x18   :  { %s481_s30 = scalar_lea.vmem %s523_s12, 256  ;;  %p486_p12 = scmp.lt.s32.totalorder %s523_s12, %s523_s12 }
  0x19   :  { %p482_p11 = scmp.ne.s32.totalorder %s523_s12, %s481_s30  ;;  %p487_p13 = scmp.lt.s32.totalorder %s481_s30, %s481_s30 }
  0x1b   :  { %p488_p0 = por %p487_p13, %p486_p12 }
  0x1d   :  { %p489_p1 = pnand %p488_p0, %p482_p11 }
  0x1f   :  { %492 = shalt.err (!%p489_p1)
}
  0x20   :  { %s499_s0 = smov 128   ;;  %s500_s3 = smov 8  }
  0x21   :  { %30 = dma.hbm_to_vmem [thread:$0]  %s578_s1, 256, %s523_s12, [#allocation5], %s499_s0, %s499_s0, %s500_s3  }
  0x22   :  { %493 = dma.done.wait [#allocation3], 128  }
  0x23   :  { %494 = vsyncadd [#allocation3], 4294967168 }
  0x24   :  { %495 = dma.done.wait [#allocation5], 256  }
  0x25   :  { %496 = vsyncadd [#allocation5], 4294967040  ;;  %v501_v0 = vmov 0.0   ;;  %vm502_vm0 = vmmov 0   ;;  %vm40_vm1 = vcmask 261120   ;;  %v39_v1 = vld [vmem:[#allocation2] sm:$0xff] }
  0x26   :  { %417 = vmatprep.subr.mxu0 %v501_v0  ;;  %419 = vmatprep.mubr.msk.f32.mxu0 %vm502_vm0, %v501_v0  ;;  %v38_v2 = vld [vmem:[#allocation4 + $0x4] sm:$0xf]  ;;  %v37_v3 = vld [vmem:[#allocation4] sm:$0xf]  ;;  %s503_s6 = smov 4   ;;  %vm141_vm2 = vcmask 1043456  }
  0x27   :  { %422 = vmatprep.subr.mxu1 %v501_v0  ;;  %424 = vmatprep.mubr.msk.f32.mxu1 %vm502_vm0, %v501_v0  ;;  %v131_v4 = vld [vmem:[#allocation4 + $0x8] sm:$0xf]  ;;  %s504_s1 = smov 124   ;;  %v402_v6 = vld [vmem:[#allocation4 + $0xc] ss:$0 sm:$0xff]  ;;  %vm118_vm3 = vcmask 27648  }
  0x28   :  { %418 = vmatpush3.xpose.msk.msra.mxu0 %vm40_vm1, %v39_v1  ;;  %121 = vrot.lane.b32.xlu0 %v38_v2, %s503_s6  ;;  %vm137_vm4 = vcmask 31744   ;;  %s505_s13 = smov 120   ;;  %s506_s14 = smov 116   ;;  %v507_v32 = vmov 16   ;;  %vm392_vm5 = vcmask 64544  }
  0x29   :  { %432 = vmatprep.subr.mxu0 %v501_v0  ;;  %423 = vmatpush3.msk.msra.mxu1 %vm141_vm2, %v131_v4 }
  0x2a   :  { %216 = vrot.lane.b32.xlu1 %v131_v4, %s504_s1  ;;  %427 = vmatprep.subr.mxu1 %v501_v0 }
  0x2b   :  { %420 = vmatmul.mubr.msk.f32.vlgmr.msra.gmra.mrb[0].mxu0 %vm40_vm1, %v37_v3  ;;  %448 = vset.pattern.permute.xlu0 %v507_v32 }
  0x2c   :  { %434 = vmatprep.mubr.msk.f32.mxu0 %vm502_vm0, %v501_v0 }
  0x2e   :  { %219 = vrot.lane.b32.xlu1 %v402_v6, %s504_s1 }
  0x32   :  { %300 = vrot.lane.b32.xlu1 %v402_v6, %s505_s13 }
  0x9a   :  { %v122_v5 = vpop.permute.xlu0 %121 }
  0x9c   :  { %v217_v12 = vpop.permute.xlu1 %216 }
  0xa0   :  { %v220_v19 = vpop.permute.xlu1 %219 }
  0xa4   :  { %v301_v24 = vpop.permute.xlu1 %300 }
  0xfe   :  { %v113_v7 = vpop.f32.mrb[0].mxu0 }
  0xff   :  { %v117_v8 = vadd.f32 %v113_v7, %v38_v2  ;;  %v124_v9 = vadd.f32 %v122_v5, %v113_v7  ;;  %v421_v10 = vpop.f32.mrb[1].mxu0 }
 0x101   :  { %126 = vrot.lane.b32.xlu0 %v124_v9, %s504_s1  ;;  %119 = vst.msk [vmem:[%s579_s2] sm:$0xf] %vm118_vm3, %v117_v8 }
 0x105   :  { %298 = vrot.lane.b32.xlu0 %v131_v4, %s505_s13 }
 0x109   :  { %379 = vrot.lane.b32.xlu0 %v402_v6, %s506_s14 }
 0x173   :  { %v127_v11 = vpop.permute.xlu0 %126 }
 0x174   :  { %129 = vst.msk [vmem:[%s579_s2 + $0x4] sm:$0xf] %vm118_vm3, %v127_v11 }
 0x177   :  { %v299_v14 = vpop.permute.xlu0 %298 }
 0x178   :  { %433 = vmatpush3.msk.msra.mxu0 %vm141_vm2, %v299_v14 }
 0x17b   :  { %v130_v13 = vld [vmem:[%s579_s2] sm:$0xff]  ;;  %v380_v28 = vpop.permute.xlu0 %379 }
 0x17c   :  { %425 = vmatmul.mubr.msk.f32.vlgmr.msra.gmra.mrb[0].mxu1 %vm137_vm4, %v130_v13 }
 0x17d   :  { %428 = vmatpush3.msk.msra.mxu1 %vm141_vm2, %v217_v12  ;;  %429 = vmatprep.mubr.msk.f32.mxu1 %vm502_vm0, %v501_v0 }
 0x24f   :  { %v211_v15 = vpop.f32.mrb[0].mxu1 }
 0x250   :  { %v212_v16 = vadd.f32 %v402_v6, %v211_v15  ;;  %v426_v17 = vpop.f32.mrb[1].mxu1 }
 0x252   :  { %v215_v18 = vmax.f32 %v212_v16, 0.0 }
 0x254   :  { %430 = vmatmul.mubr.msk.f32.vlgmr.msra.gmra.mrb[2].mxu1 %vm137_vm4, %v215_v18 }
 0x327   :  { %v293_v20 = vpop.f32.mrb[2].mxu1 }
 0x328   :  { %v294_v21 = vadd.f32 %v293_v20, %v220_v19  ;;  %v431_v22 = vpop.f32.mrb[3].mxu1 }
 0x32a   :  { %v297_v23 = vmax.f32 %v294_v21, 0.0 }
 0x32c   :  { %435 = vmatmul.mubr.msk.f32.vlgmr.msra.gmra.mrb[2].mxu0 %vm137_vm4, %v297_v23 }
 0x3ff   :  { %v374_v25 = vpop.f32.mrb[2].mxu0 }
 0x400   :  { %v375_v26 = vadd.f32 %v374_v25, %v301_v24  ;;  %v436_v27 = vpop.f32.mrb[3].mxu0 }
 0x402   :  { %v378_v29 = vmax.f32 %v375_v26, 0.0 }
 0x404   :  { %v382_v30 = vmul.f32 %v380_v28, %v378_v29 }
 0x406   :  { %v383_v31 = vsel %vm137_vm4, %v382_v30, 0.0 }
 0x407   :  { %384 = vadd.xlane.f32.xlu1 %v383_v31 }
 0x494   :  { %v385_v33 = vpop.xlane.xlu1 %384 }
 0x495   :  { %v386_v34 = vadd.f32 %v402_v6, %v385_v33 }
 0x497   :  { %389 = vperm.xlu0 %448, %v386_v34  }
 0x516   :  { %v390_v35 = vpop.permute.xlu0 %389 }
 0x517   :  { %393 = vst.msk [vmem:[%s579_s2] sm:$0xff] %vm392_vm5, %v390_v35 }
 0x518   :  { %398 = vsyncpa [#allocation3], 1 }
 0x519   :  { %399 = vsyncpa [#allocation5], 1 }

</bundles_post_ra>
